<compile_context>
chip_gen: v5e
topology: v5e:2x2
jax: 0.10.0
libtpu: 0.0.40
codegen_flags: <defaults>
</compile_context>

<pallas_src>
import jax
import jax.numpy as jnp
from jax.experimental import pallas as pl
from jax.experimental.pallas import tpu as pltpu

EMBED_DIM = 32   # config.decoder_config.embed_dim
HIDDEN = 64      # internal MLP width

# ---- weight-slab layout (all row starts 8-aligned; per block: [W | bias col])
_ROW_L1 = 0       # rows   0:64   w1  (64,3)   cols 0:3,  b1  at col 3
_ROW_L2 = 64      # rows  64:96   w2  (32,64)  cols 0:64, b2  at col 64
_ROW_H1 = 96      # rows  96:161  wh1 (65,32)  cols 0:32, bh1 at col 32
_ROW_H2 = 168     # rows 168:172  wh2 (4,64)   cols 0:64, bh2 at col 64
_W_ROWS = 176     # padded to a multiple of 8
_W_COLS = 128     # lane-dense

# ---- packed output slab rows (lane-dense (11, N); points on the lane axis)
_O_NOISE = 0      # 1 row
_O_CLEAN = 1      # 3 rows
_O_BOUND = 4      # 1 row
_O_BXYZ = 5       # 3 rows
_O_MOVED = 8      # 3 rows
_O_ROWS = 11      # == full sublane extent of the output array (no dead rows)


def _pcbd_kernel(x_ref, w_ref, out_ref):
    """One row-tile of points per grid step.  Channel-first: points on lanes,
    channels on sublanes, so all intermediates / stores are lane-dense."""
    x = x_ref[...]                                        # (3, T) f32

    # ---- FE layer 1: (64,3)@(3,T).  K=3 is pure MXU padding -> 3 VPU FMAs.
    w1 = w_ref[_ROW_L1:_ROW_L1 + HIDDEN, 0:3]             # (64, 3)
    b1 = w_ref[_ROW_L1:_ROW_L1 + HIDDEN, 3:4]             # (64, 1)
    h1 = (w1[:, 0:1] * x[0:1, :] + w1[:, 1:2] * x[1:2, :]
          + w1[:, 2:3] * x[2:3, :] + b1)
    h1 = jnp.maximum(h1, 0.0)                             # (64, T)

    # ---- FE layer 2: pw_feat = relu(W2 @ h1 + b2)
    w2 = w_ref[_ROW_L2:_ROW_L2 + EMBED_DIM, 0:HIDDEN]
    b2 = w_ref[_ROW_L2:_ROW_L2 + EMBED_DIM, HIDDEN:HIDDEN + 1]
    h2 = jnp.dot(w2, h1, preferred_element_type=jnp.float32) + b2
    h2 = jnp.maximum(h2, 0.0)                             # (32, T) == pw_feat

    # ---- fused head 1 (shared input h2): rows 0:64 -> BD hidden (pre-relu),
    #      row 64 -> noise logits.  One MXU pass instead of two.
    wh1 = w_ref[_ROW_H1:_ROW_H1 + HIDDEN + 1, 0:EMBED_DIM]
    bh1 = w_ref[_ROW_H1:_ROW_H1 + HIDDEN + 1, EMBED_DIM:EMBED_DIM + 1]
    head1 = jnp.dot(wh1, h2, preferred_element_type=jnp.float32) + bh1
    g1 = jnp.maximum(head1[0:HIDDEN, :], 0.0)             # (64, T)
    noise = jax.nn.sigmoid(head1[HIDDEN:HIDDEN + 1, :])   # (1, T)

    # score_extract(..., reserve_high=False): keep low-noise points
    cleaned = jnp.where(noise < 0.5, x, 0.0)              # (3, T)

    # ---- fused head 2 (shared input g1): rows 0:3 -> move offset (pre-tanh),
    #      row 3 -> bound logits.  One MXU pass instead of two.
    wh2 = w_ref[_ROW_H2:_ROW_H2 + 4, 0:HIDDEN]
    bh2 = w_ref[_ROW_H2:_ROW_H2 + 4, HIDDEN:HIDDEN + 1]
    head2 = jnp.dot(wh2, g1, preferred_element_type=jnp.float32) + bh2
    offset = jnp.tanh(head2[0:3, :])                      # (3, T)
    bound = jax.nn.sigmoid(head2[3:4, :])                 # (1, T)

    # score_extract(..., reserve_high=True): keep boundary points
    bxyz = jnp.where(bound >= 0.5, cleaned, 0.0)          # (3, T)
    moved = bxyz + offset                                 # (3, T)

    # ---- lane-dense packed output slab (unmasked stores along lanes)
    out_ref[_O_NOISE:_O_NOISE + 1, :] = noise
    out_ref[_O_CLEAN:_O_CLEAN + 3, :] = cleaned
    out_ref[_O_BOUND:_O_BOUND + 1, :] = bound
    out_ref[_O_BXYZ:_O_BXYZ + 3, :] = bxyz
    out_ref[_O_MOVED:_O_MOVED + 3, :] = moved


def _round_up(x, m):
    return (x + m - 1) // m * m


def init_params(key):
    ks = jax.random.split(key, 12)
    w_scale, b_scale = 0.5, 0.1

    def w(k, shape, s):
        return (s * jax.random.normal(k, shape)).astype(jnp.float32)

    return {
        # FeatureExtractor: 3 -> 64 -> 32 (pw_feat) -> noise head (1)
        "w1": w(ks[0], (HIDDEN, 3), w_scale),          "b1": w(ks[1], (HIDDEN,), b_scale),
        "w2": w(ks[2], (EMBED_DIM, HIDDEN), w_scale),  "b2": w(ks[3], (EMBED_DIM,), b_scale),
        "wn": w(ks[4], (1, EMBED_DIM), w_scale),       "bn": w(ks[5], (1,), b_scale),
        # BoundDetect: 32 -> 64 -> bound head (1) + move-offset head (3)
        "wb1": w(ks[6], (HIDDEN, EMBED_DIM), w_scale), "bb1": w(ks[7], (HIDDEN,), b_scale),
        "wb2": w(ks[8], (1, HIDDEN), w_scale),         "bb2": w(ks[9], (1,), b_scale),
        "wo": w(ks[10], (3, HIDDEN), w_scale),         "bo": w(ks[11], (3,), b_scale),
    }


def pack_params(params):
    """Pack all 12 weight/bias arrays into one lane-dense (176, 128) slab:
    a single DMA instead of 13, with zero-cost static slices in-kernel.
    Shared-input heads are pre-fused: [wb1; wn] and [wo; wb2]."""
    wh1 = jnp.concatenate([params["wb1"], params["wn"]], axis=0)   # (65, 32)
    bh1 = jnp.concatenate([params["bb1"], params["bn"]], axis=0)   # (65,)
    wh2 = jnp.concatenate([params["wo"], params["wb2"]], axis=0)   # (4, 64)
    bh2 = jnp.concatenate([params["bo"], params["bb2"]], axis=0)   # (4,)

    slab = jnp.zeros((_W_ROWS, _W_COLS), jnp.float32)

    def put(s, row, wmat, bvec):
        r, c = wmat.shape
        s = s.at[row:row + r, 0:c].set(wmat)
        s = s.at[row:row + r, c].set(bvec)
        return s

    slab = put(slab, _ROW_L1, params["w1"], params["b1"])
    slab = put(slab, _ROW_L2, params["w2"], params["b2"])
    slab = put(slab, _ROW_H1, wh1, bh1)
    slab = put(slab, _ROW_H2, wh2, bh2)
    return slab


@jax.jit
def pcbd_forward(xyz, w_slab):
    """xyz: (B, N, 3) f32 -> 5 outputs matching the reference forward()
    (already in the permuted (B, N, C) layout)."""
    B, N, _ = xyz.shape
    rows = B * N
    # Points on the lane axis; tile over all B*N points.  Tile <= 1024 lanes:
    # biggest tile that comfortably fits VMEM (all intermediates ~ 250 rows of
    # f32 per lane ~= 1 MiB at 1024 lanes) while amortizing per-step overhead.
    tile = min(1024, _round_up(rows, 128))
    padded = _round_up(rows, tile)

    x = jnp.transpose(xyz.reshape(rows, 3))               # (3, rows)
    if padded != rows:
        x = jnp.pad(x, ((0, 0), (0, padded - rows)))

    out = pl.pallas_call(
        _pcbd_kernel,
        out_shape=jax.ShapeDtypeStruct((_O_ROWS, padded), jnp.float32),
        grid_spec=pltpu.PrefetchScalarGridSpec(
            num_scalar_prefetch=0,
            grid=(padded // tile,),
            in_specs=[
                pl.BlockSpec((3, tile), lambda i: (0, i)),
                pl.BlockSpec((_W_ROWS, _W_COLS), lambda i: (0, 0)),  # resident
            ],
            out_specs=pl.BlockSpec((_O_ROWS, tile), lambda i: (0, i)),
        ),
        compiler_params=pltpu.CompilerParams(
            dimension_semantics=("parallel",)),
    )(x, w_slab)

    slab = jnp.transpose(out[:, :rows]).reshape(B, N, _O_ROWS)
    noise_label = slab[:, :, _O_NOISE:_O_NOISE + 1]
    cleaned_xyz = slab[:, :, _O_CLEAN:_O_CLEAN + 3]
    bound_label = slab[:, :, _O_BOUND:_O_BOUND + 1]
    bound_xyz = slab[:, :, _O_BXYZ:_O_BXYZ + 3]
    moved_xyz = slab[:, :, _O_MOVED:_O_MOVED + 3]
    return noise_label, cleaned_xyz, bound_label, bound_xyz, moved_xyz


def pcbd_reference(xyz, params):
    """Pure-JAX reference of the same forward pass (channels-last)."""
    hp = dict(precision=jax.lax.Precision.HIGHEST)

    def lin(x, w, b):
        return jnp.einsum("bnc,oc->bno", x, w, **hp) + b

    h1 = jnp.maximum(lin(xyz, params["w1"], params["b1"]), 0.0)
    h2 = jnp.maximum(lin(h1, params["w2"], params["b2"]), 0.0)
    noise = jax.nn.sigmoid(lin(h2, params["wn"], params["bn"]))
    cleaned = jnp.where(noise < 0.5, xyz, 0.0)
    g1 = jnp.maximum(lin(h2, params["wb1"], params["bb1"]), 0.0)
    bound = jax.nn.sigmoid(lin(g1, params["wb2"], params["bb2"]))
    bxyz = jnp.where(bound >= 0.5, cleaned, 0.0)
    moved = bxyz + jnp.tanh(lin(g1, params["wo"], params["bo"]))
    return noise, cleaned, bound, bxyz, moved


if __name__ == "__main__":
    key = jax.random.PRNGKey(0)
    k_x, k_p = jax.random.split(key)

    B, N = 2, 128
    xyz = jax.random.normal(k_x, (B, N, 3), dtype=jnp.float32)
    params = init_params(k_p)
    w_slab = pack_params(params)

    outs = pcbd_forward(xyz, w_slab)
    outs = jax.block_until_ready(outs)
    noise_label, cleaned_xyz, bound_label, bound_xyz, moved_xyz = outs

    assert noise_label.shape == (B, N, 1)
    assert cleaned_xyz.shape == (B, N, 3)
    assert bound_label.shape == (B, N, 1)
    assert bound_xyz.shape == (B, N, 3)
    assert moved_xyz.shape == (B, N, 3)
    for o in outs:
        assert bool(jnp.all(jnp.isfinite(o)))
    assert bool(jnp.all((noise_label >= 0) & (noise_label <= 1)))
    assert bool(jnp.all((bound_label >= 0) & (bound_label <= 1)))

    # Numerical check against the pure-JAX reference.  Points whose scores sit
    # within 1e-3 of the 0.5 threshold are excluded for the hard-gated outputs
    # (mask flips there are numerically legitimate).
    ref = pcbd_reference(xyz, params)
    n_ref, _, b_ref, _, _ = ref
    safe = (jnp.abs(n_ref - 0.5) > 1e-3) & (jnp.abs(b_ref - 0.5) > 1e-3)
    names = ["noise_label", "cleaned_xyz", "bound_label", "bound_xyz", "moved_xyz"]
    gated = {"cleaned_xyz", "bound_xyz", "moved_xyz"}
    for name, o, r in zip(names, outs, ref):
        assert o.shape == r.shape, name
        err = jnp.abs(o - r)
        if name in gated:
            err = jnp.where(safe, err, 0.0)
        assert float(jnp.max(err)) < 1e-3, (name, float(jnp.max(err)))

    print("KERNEL_OK")
</pallas_src>

<mosaic_0001>
module attributes {stable_mosaic.version = 11 : i64} {
  func.func @_pcbd_kernel(%arg0: i32, %arg1: memref<3x256xf32, #tpu.memory_space<vmem>>, %arg2: memref<176x128xf32, #tpu.memory_space<vmem>>, %arg3: memref<11x256xf32, #tpu.memory_space<vmem>>) attributes {dimension_semantics = [#tpu.dimension_semantics<parallel>], iteration_bounds = array<i64: 1>, scalar_prefetch = 0 : i64, scratch_operands = 0 : i64, tpu.core_type = #tpu.core_type<tc>, window_params = [{transform_indices = @transform_0, window_bounds = array<i64: 3, 256>}, {pipeline_mode = #tpu.pipeline_mode<synchronous>, transform_indices = @transform_1, window_bounds = array<i64: 176, 128>}, {transform_indices = @transform_2, window_bounds = array<i64: 11, 256>}]} {
    %c0 = arith.constant 0 : index
    %c0_0 = arith.constant 0 : index
    %0 = vector.load %arg1[%c0, %c0_0] : memref<3x256xf32, #tpu.memory_space<vmem>>, vector<3x256xf32>
    %c0_1 = arith.constant 0 : index
    %c0_2 = arith.constant 0 : index
    %1 = vector.load %arg2[%c0_1, %c0_2] : memref<176x128xf32, #tpu.memory_space<vmem>>, vector<64x3xf32>
    %c0_3 = arith.constant 0 : index
    %c3 = arith.constant 3 : index
    %2 = vector.load %arg2[%c0_3, %c3] : memref<176x128xf32, #tpu.memory_space<vmem>>, vector<64x1xf32>
    %3 = vector.extract_strided_slice %1 {offsets = [0, 0], sizes = [64, 1], strides = [1, 1]} : vector<64x3xf32> to vector<64x1xf32>
    %4 = vector.extract_strided_slice %0 {offsets = [0, 0], sizes = [1, 256], strides = [1, 1]} : vector<3x256xf32> to vector<1x256xf32>
    %5 = vector.broadcast %3 : vector<64x1xf32> to vector<64x256xf32>
    %6 = vector.broadcast %4 : vector<1x256xf32> to vector<64x256xf32>
    %7 = arith.mulf %5, %6 : vector<64x256xf32>
    %8 = vector.extract_strided_slice %1 {offsets = [0, 1], sizes = [64, 1], strides = [1, 1]} : vector<64x3xf32> to vector<64x1xf32>
    %9 = vector.extract_strided_slice %0 {offsets = [1, 0], sizes = [1, 256], strides = [1, 1]} : vector<3x256xf32> to vector<1x256xf32>
    %10 = vector.broadcast %8 : vector<64x1xf32> to vector<64x256xf32>
    %11 = vector.broadcast %9 : vector<1x256xf32> to vector<64x256xf32>
    %12 = arith.mulf %10, %11 : vector<64x256xf32>
    %13 = arith.addf %7, %12 : vector<64x256xf32>
    %14 = vector.extract_strided_slice %1 {offsets = [0, 2], sizes = [64, 1], strides = [1, 1]} : vector<64x3xf32> to vector<64x1xf32>
    %15 = vector.extract_strided_slice %0 {offsets = [2, 0], sizes = [1, 256], strides = [1, 1]} : vector<3x256xf32> to vector<1x256xf32>
    %16 = vector.broadcast %14 : vector<64x1xf32> to vector<64x256xf32>
    %17 = vector.broadcast %15 : vector<1x256xf32> to vector<64x256xf32>
    %18 = arith.mulf %16, %17 : vector<64x256xf32>
    %19 = arith.addf %13, %18 : vector<64x256xf32>
    %20 = vector.broadcast %2 : vector<64x1xf32> to vector<64x256xf32>
    %21 = arith.addf %19, %20 : vector<64x256xf32>
    %cst = arith.constant 0.000000e+00 : f32
    %22 = vector.broadcast %cst : f32 to vector<64x256xf32>
    %23 = arith.maximumf %21, %22 : vector<64x256xf32>
    %c64 = arith.constant 64 : index
    %c0_4 = arith.constant 0 : index
    %24 = vector.load %arg2[%c64, %c0_4] : memref<176x128xf32, #tpu.memory_space<vmem>>, vector<32x64xf32>
    %c64_5 = arith.constant 64 : index
    %c64_6 = arith.constant 64 : index
    %25 = vector.load %arg2[%c64_5, %c64_6] : memref<176x128xf32, #tpu.memory_space<vmem>>, vector<32x1xf32>
    %cst_7 = arith.constant dense<0.000000e+00> : vector<32x256xf32>
    %26 = tpu.matmul %24, %23, %cst_7 {dimension_numbers = #tpu.dot_dimension_numbers<[1], [0], [0], [1], [0, 0, 1, 1], [], []>} : vector<32x64xf32>, vector<64x256xf32>, vector<32x256xf32> -> vector<32x256xf32>
    %27 = vector.broadcast %25 : vector<32x1xf32> to vector<32x256xf32>
    %28 = arith.addf %26, %27 : vector<32x256xf32>
    %cst_8 = arith.constant 0.000000e+00 : f32
    %29 = vector.broadcast %cst_8 : f32 to vector<32x256xf32>
    %30 = arith.maximumf %28, %29 : vector<32x256xf32>
    %c96 = arith.constant 96 : index
    %c0_9 = arith.constant 0 : index
    %31 = vector.load %arg2[%c96, %c0_9] : memref<176x128xf32, #tpu.memory_space<vmem>>, vector<65x32xf32>
    %c96_10 = arith.constant 96 : index
    %c32 = arith.constant 32 : index
    %32 = vector.load %arg2[%c96_10, %c32] : memref<176x128xf32, #tpu.memory_space<vmem>>, vector<65x1xf32>
    %cst_11 = arith.constant dense<0.000000e+00> : vector<65x256xf32>
    %33 = tpu.matmul %31, %30, %cst_11 {dimension_numbers = #tpu.dot_dimension_numbers<[1], [0], [0], [1], [0, 0, 1, 1], [], []>} : vector<65x32xf32>, vector<32x256xf32>, vector<65x256xf32> -> vector<65x256xf32>
    %34 = vector.broadcast %32 : vector<65x1xf32> to vector<65x256xf32>
    %35 = arith.addf %33, %34 : vector<65x256xf32>
    %36 = vector.extract_strided_slice %35 {offsets = [0, 0], sizes = [64, 256], strides = [1, 1]} : vector<65x256xf32> to vector<64x256xf32>
    %cst_12 = arith.constant 0.000000e+00 : f32
    %37 = vector.broadcast %cst_12 : f32 to vector<64x256xf32>
    %38 = arith.maximumf %36, %37 : vector<64x256xf32>
    %39 = vector.extract_strided_slice %35 {offsets = [64, 0], sizes = [1, 256], strides = [1, 1]} : vector<65x256xf32> to vector<1x256xf32>
    %40 = arith.negf %39 : vector<1x256xf32>
    %41 = math.exp %40 : vector<1x256xf32>
    %cst_13 = arith.constant 1.000000e+00 : f32
    %42 = vector.broadcast %cst_13 : f32 to vector<1x256xf32>
    %43 = arith.addf %42, %41 : vector<1x256xf32>
    %44 = arith.divf %42, %43 : vector<1x256xf32>
    %cst_14 = arith.constant 5.000000e-01 : f32
    %45 = vector.broadcast %cst_14 : f32 to vector<1x256xf32>
    %46 = arith.cmpf olt, %44, %45 : vector<1x256xf32>
    %cst_15 = arith.constant 0.000000e+00 : f32
    %47 = vector.shape_cast %46 : vector<1x256xi1> to vector<1x256xi1>
    %48 = vector.broadcast %47 : vector<1x256xi1> to vector<3x256xi1>
    %49 = vector.broadcast %cst_15 : f32 to vector<3x256xf32>
    %50 = arith.select %48, %0, %49 : vector<3x256xi1>, vector<3x256xf32>
    %c168 = arith.constant 168 : index
    %c0_16 = arith.constant 0 : index
    %51 = vector.load %arg2[%c168, %c0_16] : memref<176x128xf32, #tpu.memory_space<vmem>>, vector<4x64xf32>
    %c168_17 = arith.constant 168 : index
    %c64_18 = arith.constant 64 : index
    %52 = vector.load %arg2[%c168_17, %c64_18] : memref<176x128xf32, #tpu.memory_space<vmem>>, vector<4x1xf32>
    %cst_19 = arith.constant dense<0.000000e+00> : vector<4x256xf32>
    %53 = tpu.matmul %51, %38, %cst_19 {dimension_numbers = #tpu.dot_dimension_numbers<[1], [0], [0], [1], [0, 0, 1, 1], [], []>} : vector<4x64xf32>, vector<64x256xf32>, vector<4x256xf32> -> vector<4x256xf32>
    %54 = vector.broadcast %52 : vector<4x1xf32> to vector<4x256xf32>
    %55 = arith.addf %53, %54 : vector<4x256xf32>
    %56 = vector.extract_strided_slice %55 {offsets = [0, 0], sizes = [3, 256], strides = [1, 1]} : vector<4x256xf32> to vector<3x256xf32>
    %57 = math.tanh %56 : vector<3x256xf32>
    %58 = vector.extract_strided_slice %55 {offsets = [3, 0], sizes = [1, 256], strides = [1, 1]} : vector<4x256xf32> to vector<1x256xf32>
    %59 = arith.negf %58 : vector<1x256xf32>
    %60 = math.exp %59 : vector<1x256xf32>
    %cst_20 = arith.constant 1.000000e+00 : f32
    %61 = vector.broadcast %cst_20 : f32 to vector<1x256xf32>
    %62 = arith.addf %61, %60 : vector<1x256xf32>
    %63 = arith.divf %61, %62 : vector<1x256xf32>
    %cst_21 = arith.constant 5.000000e-01 : f32
    %64 = vector.broadcast %cst_21 : f32 to vector<1x256xf32>
    %65 = arith.cmpf oge, %63, %64 : vector<1x256xf32>
    %cst_22 = arith.constant 0.000000e+00 : f32
    %66 = vector.shape_cast %65 : vector<1x256xi1> to vector<1x256xi1>
    %67 = vector.broadcast %66 : vector<1x256xi1> to vector<3x256xi1>
    %68 = vector.broadcast %cst_22 : f32 to vector<3x256xf32>
    %69 = arith.select %67, %50, %68 : vector<3x256xi1>, vector<3x256xf32>
    %70 = arith.addf %69, %57 : vector<3x256xf32>
    %c0_23 = arith.constant 0 : index
    %c0_24 = arith.constant 0 : index
    %71 = vector.load %arg3[%c0_23, %c0_24] : memref<11x256xf32, #tpu.memory_space<vmem>>, vector<1x256xf32>
    tpu.vector_store %arg3[%c0_23, %c0_24], %44 {strides = array<i32>} : memref<11x256xf32, #tpu.memory_space<vmem>>, vector<1x256xf32>,
    %c1 = arith.constant 1 : index
    %c0_25 = arith.constant 0 : index
    %72 = vector.load %arg3[%c1, %c0_25] : memref<11x256xf32, #tpu.memory_space<vmem>>, vector<3x256xf32>
    tpu.vector_store %arg3[%c1, %c0_25], %50 {strides = array<i32>} : memref<11x256xf32, #tpu.memory_space<vmem>>, vector<3x256xf32>,
    %c4 = arith.constant 4 : index
    %c0_26 = arith.constant 0 : index
    %73 = vector.load %arg3[%c4, %c0_26] : memref<11x256xf32, #tpu.memory_space<vmem>>, vector<1x256xf32>
    tpu.vector_store %arg3[%c4, %c0_26], %63 {strides = array<i32>} : memref<11x256xf32, #tpu.memory_space<vmem>>, vector<1x256xf32>,
    %c5 = arith.constant 5 : index
    %c0_27 = arith.constant 0 : index
    %74 = vector.load %arg3[%c5, %c0_27] : memref<11x256xf32, #tpu.memory_space<vmem>>, vector<3x256xf32>
    tpu.vector_store %arg3[%c5, %c0_27], %69 {strides = array<i32>} : memref<11x256xf32, #tpu.memory_space<vmem>>, vector<3x256xf32>,
    %c8 = arith.constant 8 : index
    %c0_28 = arith.constant 0 : index
    %75 = vector.load %arg3[%c8, %c0_28] : memref<11x256xf32, #tpu.memory_space<vmem>>, vector<3x256xf32>
    tpu.vector_store %arg3[%c8, %c0_28], %70 {strides = array<i32>} : memref<11x256xf32, #tpu.memory_space<vmem>>, vector<3x256xf32>,
    return
  }
  func.func @transform_0(%arg0: i32) -> (i32, i32) {
    %c0_i32 = arith.constant 0 : i32
    %c0_i32_0 = arith.constant 0 : i32
    return %c0_i32, %arg0 : i32, i32
  }
  func.func @transform_1(%arg0: i32) -> (i32, i32) {
    %c0_i32 = arith.constant 0 : i32
    %c0_i32_0 = arith.constant 0 : i32
    %c0_i32_1 = arith.constant 0 : i32
    return %c0_i32, %c0_i32_0 : i32, i32
  }
  func.func @transform_2(%arg0: i32) -> (i32, i32) {
    %c0_i32 = arith.constant 0 : i32
    %c0_i32_0 = arith.constant 0 : i32
    return %c0_i32, %arg0 : i32, i32
  }
}

</mosaic_0001>

<bundles_post_ra>
// kernel: pcbd_forward.1
= control target key start
LH: loop header
LB: loop body
LE: loop exit
PB: predicated region body
PF: predicated region fallthrough
CT: control target
= control target key end

     0   :  { %7 = vsyncpa [#allocation3], 0  ;;  %s897_s12 = smov [#allocation2]   ;;  %s898_s14 = smov 128   ;;  %s1107_s0 = inlined_call_operand.vmem [shape: f32[3,256], index: 0, kind: input, shape index: {}]   ;;  %s1108_s1 = inlined_call_operand.hbm [shape: f32[176,128], index: 1, kind: input, shape index: {}]   ;;  %s1109_s2 = inlined_call_operand.vmem [shape: f32[11,256], index: 2, kind: output, shape index: {}]  }
   0x1   :  { %s14_s11 = sshll.u32 %s1108_s1, 4  ;;  %s16_s13 = sshll.u32 %s897_s12, 4  ;;  %s15_s11 = int_to_ptr.hbm [resolvable:$true] %s14_s11  ;;  %s17_s13 = int_to_ptr.vmem [resolvable:$true] %s16_s13 }
   0x2   :  { %s899_s15 = smov 8  }
   0x3   :  { %22 = dma.hbm_to_vmem [thread:$0]  %s15_s11, 2816, %s17_s13, [#allocation3], %s898_s14, %s898_s14, %s899_s15  }
   0x4   :  { %895 = dma.done.wait [#allocation3], 2816  }
   0x5   :  { %896 = vsyncadd [#allocation3], 4294964480  ;;  %v900_v0 = vmov 2   ;;  %v901_v1 = vmov 0   ;;  %v35_v2 = vld [vmem:[#allocation2 + $0x38] sm:$0xff]  ;;  %v34_v3 = vld [vmem:[#allocation2 + $0x30] sm:$0xff] }
   0x6   :  { %822 = vset.pattern.permute.xlu2 %v900_v0  ;;  %820 = vset.pattern.permute.xlu1 %v901_v1  ;;  %v32_v4 = vld [vmem:[#allocation2 + $0x20] sm:$0xff]  ;;  %v33_v5 = vld [vmem:[#allocation2 + $0x28] sm:$0xff]  ;;  %v902_v6 = vmov 1   ;;  %v31_v7 = vld [vmem:[#allocation2 + $0x18] sm:$0xff]  ;;  %v903_v8 = vmov 3   ;;  %vm327_vm0 = vcmask 523264  }
   0x7   :  { %819 = vset.pattern.permute.xlu0 %v901_v1  ;;  %198 = vperm.xlu2 %822, %v35_v2   ;;  %v30_v9 = vld [vmem:[#allocation2 + $0x10] sm:$0xff]  ;;  %v28_v10 = vld [vmem:[#allocation2] sm:$0xff]  ;;  %v27_v11 = vld [vmem:[%s1107_s0] sm:$0x77]  ;;  %vm456_vm1 = vcmask 261120   ;;  %vm735_vm11 = vcmask 1040384  }
   0x8   :  { %73 = vperm.xlu0 %819, %v35_v2   ;;  %68 = vperm.xlu1 %820, %v34_v3   ;;  %625 = vst [vmem:[#allocation1] ss:$2 sm:$0xff] %v27_v11  ;;  %v29_v12 = vld [vmem:[#allocation2 + $0x8] sm:$0xff]  ;;  %v131_v22 = vperm.slane %v27_v11, 1  ;;  %v132_v23 = vperm.slane %v27_v11, 5  ;;  %v77_v25 = vperm.slane %v27_v11, 0 }
   0x9   :  { %v78_v26 = vperm.slane %v27_v11, 4  ;;  %v201_v29 = vperm.slane %v27_v11, 2  ;;  %v202_v30 = vperm.slane %v27_v11, 6 }
   0xa   :  { %v940_v27 = vperm.slane %v131_v22, 1  ;;  %v942_v28 = vperm.slane %v132_v23, 1  ;;  %v944_v31 = vperm.slane %v77_v25, 0 }
   0xb   :  { %v946_v32 = vperm.slane %v78_v26, 0  ;;  %v954_v42 = vperm.slane %v201_v29, 2  ;;  %v956_v43 = vperm.slane %v202_v30, 2 }
   0xf   :  { %823 = vset.pattern.permute.xlu2 %v901_v1 }
  0x10   :  { %58 = vperm.xlu0 %819, %v32_v4   ;;  %821 = vset.pattern.permute.xlu1 %v902_v6 }
  0x11   :  { %63 = vperm.xlu2 %823, %v33_v5   ;;  %124 = vperm.xlu1 %821, %v34_v3  }
  0x18   :  { %825 = vset.pattern.permute.xlu0 %v902_v6 }
  0x19   :  { %824 = vset.pattern.permute.xlu2 %v900_v0  ;;  %128 = vperm.xlu0 %825, %v35_v2  }
  0x1a   :  { %120 = vperm.xlu1 %821, %v33_v5   ;;  %194 = vperm.xlu2 %824, %v34_v3  }
  0x21   :  { %112 = vperm.xlu0 %825, %v31_v7  }
  0x22   :  { %116 = vperm.xlu1 %821, %v32_v4   ;;  %190 = vperm.xlu2 %824, %v33_v5  }
  0x29   :  { %836 = vset.pattern.permute.xlu0 %v903_v8 }
  0x2a   :  { %826 = vset.pattern.permute.xlu1 %v903_v8  ;;  %827 = vset.pattern.permute.xlu2 %v901_v1 }
  0x2b   :  { %268 = vperm.xlu1 %826, %v35_v2   ;;  %256 = vperm.xlu0 %836, %v32_v4  }
  0x2c   :  { %53 = vperm.xlu2 %827, %v31_v7  }
  0x33   :  { %828 = vset.pattern.permute.xlu1 %v900_v0  ;;  %837 = vset.pattern.permute.xlu0 %v900_v0 }
  0x34   :  { %186 = vperm.xlu1 %828, %v32_v4   ;;  %182 = vperm.xlu0 %837, %v31_v7  }
  0x35   :  { %829 = vset.pattern.permute.xlu2 %v903_v8 }
  0x36   :  { %264 = vperm.xlu2 %829, %v34_v3  }
  0x3c   :  { %830 = vset.pattern.permute.xlu1 %v901_v1  ;;  %170 = vperm.xlu0 %837, %v28_v10  }
  0x3d   :  { %48 = vperm.xlu1 %830, %v30_v9  }
  0x3e   :  { %831 = vset.pattern.permute.xlu2 %v902_v6 }
  0x3f   :  { %108 = vperm.xlu2 %831, %v30_v9  }
  0x45   :  { %832 = vset.pattern.permute.xlu1 %v903_v8 }
  0x46   :  { %260 = vperm.xlu1 %832, %v33_v5  }
  0x47   :  { %833 = vset.pattern.permute.xlu2 %v901_v1 }
  0x48   :  { %43 = vperm.xlu2 %833, %v29_v12  }
  0x4e   :  { %834 = vset.pattern.permute.xlu1 %v902_v6 }
  0x4f   :  { %104 = vperm.xlu1 %834, %v29_v12  }
  0x50   :  { %835 = vset.pattern.permute.xlu2 %v900_v0 }
  0x51   :  { %178 = vperm.xlu2 %835, %v30_v9  }
  0x57   :  { %838 = vset.pattern.permute.xlu1 %v901_v1 }
  0x58   :  { %38 = vperm.xlu1 %838, %v28_v10  }
  0x59   :  { %839 = vset.pattern.permute.xlu2 %v902_v6 }
  0x5a   :  { %100 = vperm.xlu2 %839, %v28_v10  }
  0x60   :  { %840 = vset.pattern.permute.xlu1 %v900_v0 }
  0x61   :  { %174 = vperm.xlu1 %840, %v29_v12   ;;  %v199_v13 = vpop.permute.xlu2 %198 }
  0x62   :  { %841 = vset.pattern.permute.xlu2 %v903_v8  ;;  %v221_v53 = vmul.f32 %v954_v42, %v199_v13  ;;  %v222_v54 = vmul.f32 %v956_v43, %v199_v13 }
  0x63   :  { %252 = vperm.xlu2 %841, %v31_v7  }
  0x69   :  { %842 = vset.pattern.permute.xlu1 %v903_v8 }
  0x6a   :  { %248 = vperm.xlu1 %842, %v30_v9  }
  0x6b   :  { %v934_v14 = vpop.permute.xlu2 %63  ;;  %244 = vperm.xlu2 %841, %v29_v12  }
  0x6c   :  { %v94_v22 = vmul.f32 %v946_v32, %v934_v14 }
  0x72   :  { %240 = vperm.xlu1 %842, %v28_v10  }
  0x74   :  { %v195_v15 = vpop.permute.xlu2 %194 }
  0x75   :  { %v219_v46 = vmul.f32 %v954_v42, %v195_v15  ;;  %v220_v47 = vmul.f32 %v956_v43, %v195_v15 }
  0x7a   :  { %v69_v16 = vpop.permute.xlu1 %68  ;;  %v74_v17 = vpop.permute.xlu0 %73 }
  0x7b   :  { %v97_v35 = vmul.f32 %v944_v31, %v74_v17  ;;  %v98_v36 = vmul.f32 %v946_v32, %v74_v17  ;;  %v95_v44 = vmul.f32 %v944_v31, %v69_v16  ;;  %v96_v45 = vmul.f32 %v946_v32, %v69_v16 }
  0x7c   :  { %v936_v18 = vpop.permute.xlu2 %190 }
  0x82   :  { %v59_v20 = vpop.permute.xlu0 %58 }
  0x83   :  { %v125_v19 = vpop.permute.xlu1 %124  ;;  %v91_v10 = vmul.f32 %v944_v31, %v59_v20  ;;  %v92_v11 = vmul.f32 %v946_v32, %v59_v20  ;;  %v217_v20 = vmul.f32 %v954_v42, %v936_v18 }
  0x84   :  { %v149_v37 = vmul.f32 %v940_v27, %v125_v19  ;;  %v150_v38 = vmul.f32 %v942_v28, %v125_v19  ;;  %v93_v19 = vmul.f32 %v944_v31, %v934_v14 }
  0x86   :  { %v938_v21 = vpop.permute.xlu2 %53  ;;  %v165_v48 = vadd.f32 %v149_v37, %v95_v44  ;;  %v166_v49 = vadd.f32 %v150_v38, %v96_v45 }
  0x87   :  { %v90_v14 = vmul.f32 %v946_v32, %v938_v21 }
  0x88   :  { %v235_v55 = vadd.f32 %v219_v46, %v165_v48  ;;  %v236_v56 = vadd.f32 %v220_v47, %v166_v49 }
  0x8b   :  { %v129_v33 = vpop.permute.xlu0 %128 }
  0x8c   :  { %v121_v24 = vpop.permute.xlu1 %120  ;;  %v151_v39 = vmul.f32 %v940_v27, %v129_v33  ;;  %v152_v40 = vmul.f32 %v942_v28, %v129_v33 }
  0x8d   :  { %v147_v12 = vmul.f32 %v940_v27, %v121_v24  ;;  %v148_v13 = vmul.f32 %v942_v28, %v121_v24  ;;  %v218_v24 = vmul.f32 %v956_v43, %v936_v18 }
  0x8e   :  { %v167_v50 = vadd.f32 %v151_v39, %v97_v35  ;;  %v168_v51 = vadd.f32 %v152_v40, %v98_v36 }
  0x8f   :  { %v163_v26 = vadd.f32 %v147_v12, %v93_v19  ;;  %v164_v29 = vadd.f32 %v148_v13, %v94_v22 }
  0x90   :  { %v265_v34 = vpop.permute.xlu2 %264  ;;  %v237_v57 = vadd.f32 %v221_v53, %v167_v50  ;;  %v238_v58 = vadd.f32 %v222_v54, %v168_v51 }
  0x91   :  { %v283_v60 = vadd.f32 %v265_v34, %v235_v55  ;;  %v284_v61 = vadd.f32 %v265_v34, %v236_v56  ;;  %v89_v34 = vmul.f32 %v944_v31, %v938_v21  ;;  %v234_v18 = vadd.f32 %v218_v24, %v164_v29 }
  0x93   :  { %v113_v3 = vpop.permute.xlu0 %112  ;;  %v299_v5 = vmax.f32 %v283_v60, 0.0  ;;  %v300_v6 = vmax.f32 %v284_v61, 0.0 }
  0x94   :  { %v117_v41 = vpop.permute.xlu1 %116  ;;  %v143_v35 = vmul.f32 %v940_v27, %v113_v3  ;;  %v144_v36 = vmul.f32 %v942_v28, %v113_v3 }
  0x95   :  { %v145_v15 = vmul.f32 %v940_v27, %v117_v41  ;;  %v146_v16 = vmul.f32 %v942_v28, %v117_v41  ;;  %v233_v41 = vadd.f32 %v217_v20, %v163_v26 }
  0x96   :  { %v159_v44 = vadd.f32 %v143_v35, %v89_v34  ;;  %v160_v45 = vadd.f32 %v144_v36, %v90_v14  ;;  %v304_v36 = vld [vmem:[#allocation2 + $0x48] sm:$0xff] }
  0x97   :  { %v161_v30 = vadd.f32 %v145_v15, %v91_v10  ;;  %v162_v33 = vadd.f32 %v146_v16, %v92_v11 }
  0x99   :  { %v962_v52 = vpop.permute.xlu2 %108 }
  0x9a   :  { %v141_v3 = vmul.f32 %v940_v27, %v962_v52 }
  0x9d   :  { %v269_v59 = vpop.permute.xlu1 %268  ;;  %v257_v8 = vpop.permute.xlu0 %256 }
  0x9e   :  { %v285_v62 = vadd.f32 %v269_v59, %v237_v57  ;;  %v286_v63 = vadd.f32 %v269_v59, %v238_v58 }
  0xa0   :  { %v301_v0 = vmax.f32 %v285_v62, 0.0  ;;  %v302_v2 = vmax.f32 %v286_v63, 0.0 }
  0xa2   :  { %344 = vmatpush.msra.mxu0 %v301_v0  ;;  %373 = vmatpush.msra.mxu1 %v302_v2  ;;  %v966_v4 = vpop.permute.xlu2 %43 }
  0xa3   :  { %v85_v12 = vmul.f32 %v944_v31, %v966_v4  ;;  %v86_v15 = vmul.f32 %v946_v32, %v966_v4 }
  0xa4   :  { %345 = vmatpush.msra.mxu0 %v299_v5  ;;  %374 = vmatpush.msra.mxu1 %v300_v6  ;;  %v142_v5 = vmul.f32 %v942_v28, %v962_v52 }
  0xa6   :  { %v187_v7 = vpop.permute.xlu1 %186  ;;  %v183_v40 = vpop.permute.xlu0 %182 }
  0xa7   :  { %v215_v23 = vmul.f32 %v954_v42, %v187_v7  ;;  %v216_v25 = vmul.f32 %v956_v43, %v187_v7  ;;  %v213_v46 = vmul.f32 %v954_v42, %v183_v40  ;;  %v214_v47 = vmul.f32 %v956_v43, %v183_v40  ;;  %v305_v40 = vld [vmem:[#allocation2 + $0x50] sm:$0xff] }
  0xa9   :  { %v231_v38 = vadd.f32 %v215_v23, %v161_v30  ;;  %v232_v39 = vadd.f32 %v216_v25, %v162_v33  ;;  %v229_v55 = vadd.f32 %v213_v46, %v159_v44  ;;  %v230_v56 = vadd.f32 %v214_v47, %v160_v45 }
  0xab   :  { %v968_v9 = vpop.permute.xlu2 %178  ;;  %v279_v21 = vadd.f32 %v257_v8, %v231_v38  ;;  %v280_v51 = vadd.f32 %v257_v8, %v232_v39 }
  0xac   :  { %v211_v52 = vmul.f32 %v954_v42, %v968_v9 }
  0xad   :  { %v295_v58 = vmax.f32 %v279_v21, 0.0  ;;  %v296_v59 = vmax.f32 %v280_v51, 0.0  ;;  %v303_v51 = vld [vmem:[#allocation2 + $0x40] sm:$0xff] }
  0xae   :  { %v171_v35 = vpop.permute.xlu0 %170 }
  0xaf   :  { %v49_v17 = vpop.permute.xlu1 %48 }
  0xb0   :  { %v87_v6 = vmul.f32 %v944_v31, %v49_v17  ;;  %v88_v7 = vmul.f32 %v946_v32, %v49_v17  ;;  %v212_v17 = vmul.f32 %v956_v43, %v968_v9  ;;  %v904_v9 = vmov 64  }
  0xb1   :  { %845 = vset.pattern.permute.xlu1 %v904_v9  ;;  %844 = vset.pattern.permute.xlu0 %v904_v9 }
  0xb2   :  { %v157_v19 = vadd.f32 %v141_v3, %v87_v6  ;;  %v158_v22 = vadd.f32 %v142_v5, %v88_v7  ;;  %314 = vperm.xlu1 %845, %v304_v36   ;;  %843 = vset.pattern.permute.xlu2 %v904_v9 }
  0xb3   :  { %319 = vperm.xlu0 %844, %v305_v40  }
  0xb4   :  { %v101_v37 = vpop.permute.xlu2 %100  ;;  %v227_v30 = vadd.f32 %v211_v52, %v157_v19  ;;  %v228_v33 = vadd.f32 %v212_v17, %v158_v22  ;;  %v406_v19 = vld [vmem:[#allocation2 + $0x80] sm:$0xff] }
  0xb5   :  { %v137_v29 = vmul.f32 %v940_v27, %v101_v37  ;;  %v138_v4 = vmul.f32 %v942_v28, %v101_v37 }
  0xb8   :  { %v261_v48 = vpop.permute.xlu1 %260 }
  0xb9   :  { %v281_v49 = vadd.f32 %v261_v48, %v233_v41  ;;  %v282_v50 = vadd.f32 %v261_v48, %v234_v18 }
  0xbb   :  { %v297_v53 = vmax.f32 %v281_v49, 0.0  ;;  %v298_v54 = vmax.f32 %v282_v50, 0.0 }
  0xbd   :  { %v253_v57 = vpop.permute.xlu2 %252  ;;  %346 = vmatpush.msra.mxu0 %v297_v53  ;;  %375 = vmatpush.msra.mxu1 %v298_v54 }
  0xbe   :  { %v277_v60 = vadd.f32 %v253_v57, %v229_v55  ;;  %v278_v61 = vadd.f32 %v253_v57, %v230_v56  ;;  %v905_v57 = vmov 32  }
  0xbf   :  { %347 = vmatpush.msra.mxu0 %v295_v58  ;;  %376 = vmatpush.msra.mxu1 %v296_v59 }
  0xc0   :  { %v293_v62 = vmax.f32 %v277_v60, 0.0  ;;  %v294_v63 = vmax.f32 %v278_v61, 0.0  ;;  %848 = vset.pattern.permute.xlu0 %v905_v57  ;;  %846 = vset.pattern.permute.xlu1 %v905_v57  ;;  %v1029_v60 = vld [vmem:[#allocation2 + $0x88] sm:$0xff] }
  0xc1   :  { %v105_v0 = vpop.permute.xlu1 %104  ;;  %438 = vperm.xlu0 %848, %v1029_v60  }
  0xc2   :  { %348 = vmatpush.msra.mxu0 %v293_v62  ;;  %377 = vmatpush.msra.mxu1 %v294_v63  ;;  %v139_v8 = vmul.f32 %v940_v27, %v105_v0  ;;  %v140_v10 = vmul.f32 %v942_v28, %v105_v0  ;;  %v306_v27 = vld [vmem:[#allocation2 + $0x58] sm:$0xff]  ;;  %v402_v0 = vld [vmem:[#allocation2 + $0x60] sm:$0xff] }
  0xc3   :  { %324 = vperm.xlu2 %843, %v306_v27  }
  0xc4   :  { %v155_v23 = vadd.f32 %v139_v8, %v85_v12  ;;  %v156_v25 = vadd.f32 %v140_v10, %v86_v15 }
  0xc5   :  { %v245_v24 = vpop.permute.xlu2 %244 }
  0xc9   :  { %413 = vperm.xlu0 %848, %v402_v0  }
  0xca   :  { %v39_v2 = vpop.permute.xlu1 %38 }
  0xcb   :  { %v83_v34 = vmul.f32 %v944_v31, %v39_v2  ;;  %v84_v14 = vmul.f32 %v946_v32, %v39_v2  ;;  %v207_v31 = vmul.f32 %v954_v42, %v171_v35  ;;  %v208_v32 = vmul.f32 %v956_v43, %v171_v35  ;;  %309 = vperm.xlu2 %843, %v303_v51   ;;  %v409_v2 = vld [vmem:[#allocation2 + $0x98] sm:$0xff]  ;;  %v410_v35 = vld [vmem:[#allocation2 + $0xa0] sm:$0x1] }
  0xcc   :  { %448 = vperm.xlu1 %846, %v409_v2  }
  0xcd   :  { %v153_v18 = vadd.f32 %v137_v29, %v83_v34  ;;  %v154_v44 = vadd.f32 %v138_v4, %v84_v14  ;;  %v404_v4 = vld [vmem:[#allocation2 + $0x70] sm:$0xff]  ;;  %v403_v34 = vld [vmem:[#allocation2 + $0x68] sm:$0xff]  ;;  %v405_v14 = vld [vmem:[#allocation2 + $0x78] sm:$0xff] }
  0xcf   :  { %v223_v49 = vadd.f32 %v207_v31, %v153_v18  ;;  %v224_v50 = vadd.f32 %v208_v32, %v154_v44 }
  0xd1   :  { %850 = vset.pattern.permute.xlu0 %v904_v9 }
  0xd3   :  { %v175_v11 = vpop.permute.xlu1 %174  ;;  %847 = vset.pattern.permute.xlu2 %v905_v57 }
  0xd4   :  { %v209_v13 = vmul.f32 %v954_v42, %v175_v11  ;;  %v210_v16 = vmul.f32 %v956_v43, %v175_v11  ;;  %433 = vperm.xlu1 %846, %v406_v19  }
  0xd6   :  { %v225_v20 = vadd.f32 %v209_v13, %v155_v23  ;;  %v226_v26 = vadd.f32 %v210_v16, %v156_v25 }
  0xd8   :  { %v273_v38 = vadd.f32 %v245_v24, %v225_v20  ;;  %v274_v41 = vadd.f32 %v245_v24, %v226_v26 }
  0xda   :  { %v289_v47 = vmax.f32 %v273_v38, 0.0  ;;  %v290_v48 = vmax.f32 %v274_v41, 0.0 }
  0xdc   :  { %v249_v39 = vpop.permute.xlu1 %248  ;;  %423 = vperm.xlu1 %846, %v404_v4  }
  0xdd   :  { %v275_v28 = vadd.f32 %v249_v39, %v227_v30  ;;  %v276_v37 = vadd.f32 %v249_v39, %v228_v33  ;;  %v408_v33 = vld [vmem:[#allocation2 + $0x90] sm:$0xff] }
  0xde   :  { %443 = vperm.xlu2 %847, %v408_v33  }
  0xdf   :  { %v291_v45 = vmax.f32 %v275_v28, 0.0  ;;  %v292_v46 = vmax.f32 %v276_v37, 0.0 }
  0xe1   :  { %349 = vmatpush.msra.mxu0 %v291_v45  ;;  %378 = vmatpush.msra.mxu1 %v292_v46  ;;  %v1058_v46 = vld [vmem:[#allocation2 + $0xa8] sm:$0xf] }
  0xe3   :  { %350 = vmatpush.msra.mxu0 %v289_v47  ;;  %379 = vmatpush.msra.mxu1 %v290_v48 }
  0xe4   :  { %v241_v21 = vpop.permute.xlu1 %240  ;;  %453 = vperm.xlu1 %846, %v410_v35  }
  0xe5   :  { %v271_v53 = vadd.f32 %v241_v21, %v223_v49  ;;  %v272_v54 = vadd.f32 %v241_v21, %v224_v50 }
  0xe6   :  { %428 = vperm.xlu2 %847, %v405_v14  }
  0xe7   :  { %v287_v42 = vmax.f32 %v271_v53, 0.0  ;;  %v288_v55 = vmax.f32 %v272_v54, 0.0 }
  0xe9   :  { %351 = vmatpush.msra.mxu0 %v287_v42  ;;  %380 = vmatpush.msra.mxu1 %v288_v55 }
  0xea   :  { %777 = vmatmul.msk.f32.vlgmr.msra.gmra.mxu0 %vm327_vm0, %v303_v51  ;;  %781 = vmatmul.msk.f32.vlgmr.msra.gmra.mxu1 %vm327_vm0, %v303_v51 }
  0xee   :  { %418 = vperm.xlu2 %847, %v403_v34  }
  0xf2   :  { %778 = vmatmul.msk.f32.gmra.mxu0 %vm327_vm0, %v304_v36  ;;  %782 = vmatmul.msk.f32.gmra.mxu1 %vm327_vm0, %v304_v36 }
  0xf6   :  { %849 = vset.pattern.permute.xlu2 %v904_v9 }
  0xf7   :  { %635 = vperm.xlu2 %849, %v1058_v46  }
  0xfa   :  { %779 = vmatmul.msk.f32.gmra.mxu0 %vm327_vm0, %v305_v40  ;;  %783 = vmatmul.msk.f32.gmra.mxu1 %vm327_vm0, %v305_v40 }
 0x102   :  { %780 = vmatmul.msk.f32.gmra.mxu0 %vm327_vm0, %v306_v27  ;;  %784 = vmatmul.msk.f32.gmra.mxu1 %vm327_vm0, %v306_v27 }
 0x11d   :  { %v325_v61 = vpop.permute.xlu2 %324 }
 0x124   :  { %v315_v5 = vpop.permute.xlu1 %314 }
 0x125   :  { %v320_v3 = vpop.permute.xlu0 %319  ;;  %v310_v13 = vpop.permute.xlu2 %309 }
 0x133   :  { %v439_v21 = vpop.permute.xlu0 %438 }
 0x138   :  { %v444_v45 = vpop.permute.xlu2 %443 }
 0x13e   :  { %v449_v32 = vpop.permute.xlu1 %448 }
 0x140   :  { %v429_v50 = vpop.permute.xlu2 %428 }
 0x146   :  { %v434_v47 = vpop.permute.xlu1 %433 }
 0x14e   :  { %v424_v51 = vpop.permute.xlu1 %423 }
 0x167   :  { %v353_v43 = vpop.f32.mrf.mxu0  ;;  %v382_v56 = vpop.f32.mrf.mxu1 }
 0x168   :  { %v354_v22 = vadd.f32 %v353_v43, %v310_v13  ;;  %v383_v23 = vadd.f32 %v382_v56, %v310_v13 }
 0x16a   :  { %v394_v29 = vmax.f32 %v354_v22, 0.0  ;;  %v395_v30 = vmax.f32 %v383_v23, 0.0 }
 0x16f   :  { %v356_v58 = vpop.f32.mrf.mxu0  ;;  %v385_v59 = vpop.f32.mrf.mxu1 }
 0x170   :  { %v357_v15 = vadd.f32 %v356_v58, %v315_v5  ;;  %v386_v52 = vadd.f32 %v385_v59, %v315_v5 }
 0x172   :  { %v396_v24 = vmax.f32 %v357_v15, 0.0  ;;  %v397_v26 = vmax.f32 %v386_v52, 0.0  ;;  %v414_v15 = vpop.permute.xlu0 %413 }
 0x177   :  { %v359_v62 = vpop.f32.mrf.mxu0  ;;  %v388_v63 = vpop.f32.mrf.mxu1 }
 0x178   :  { %v360_v8 = vadd.f32 %v359_v62, %v320_v3  ;;  %v389_v10 = vadd.f32 %v388_v63, %v320_v3 }
 0x17a   :  { %v398_v25 = vmax.f32 %v360_v8, 0.0  ;;  %v399_v20 = vmax.f32 %v389_v10, 0.0  ;;  %v454_v8 = vpop.permute.xlu1 %453 }
 0x17f   :  { %v362_v6 = vpop.f32.mrf.mxu0  ;;  %v391_v7 = vpop.f32.mrf.mxu1 }
 0x180   :  { %v363_v11 = vadd.f32 %v362_v6, %v325_v61  ;;  %v392_v12 = vadd.f32 %v391_v7, %v325_v61 }
 0x182   :  { %v400_v16 = vmax.f32 %v363_v11, 0.0  ;;  %v401_v17 = vmax.f32 %v392_v12, 0.0 }
 0x184   :  { %487 = vmatpush.msra.mxu2 %v400_v16  ;;  %531 = vmatpush.msra.mxu3 %v401_v17 }
 0x186   :  { %488 = vmatpush.msra.mxu2 %v398_v25  ;;  %532 = vmatpush.msra.mxu3 %v399_v20 }
 0x188   :  { %489 = vmatpush.msra.mxu2 %v396_v24  ;;  %533 = vmatpush.msra.mxu3 %v397_v26 }
 0x18a   :  { %490 = vmatpush.msra.mxu2 %v394_v29  ;;  %534 = vmatpush.msra.mxu3 %v395_v30 }
 0x18b   :  { %785 = vmatmul.msk.f32.vlgmr.msra.gmra.mxu2 %vm456_vm1, %v402_v0  ;;  %794 = vmatmul.msk.f32.vlgmr.msra.gmra.mxu3 %vm456_vm1, %v402_v0 }
 0x193   :  { %786 = vmatmul.msk.f32.gmra.mxu2 %vm456_vm1, %v403_v34  ;;  %795 = vmatmul.msk.f32.gmra.mxu3 %vm456_vm1, %v403_v34 }
 0x19b   :  { %787 = vmatmul.msk.f32.gmra.mxu2 %vm456_vm1, %v404_v4  ;;  %796 = vmatmul.msk.f32.gmra.mxu3 %vm456_vm1, %v404_v4 }
 0x1a3   :  { %788 = vmatmul.msk.f32.gmra.mxu2 %vm456_vm1, %v405_v14  ;;  %797 = vmatmul.msk.f32.gmra.mxu3 %vm456_vm1, %v405_v14 }
 0x1ab   :  { %789 = vmatmul.msk.f32.gmra.mxu2 %vm456_vm1, %v406_v19  ;;  %798 = vmatmul.msk.f32.gmra.mxu3 %vm456_vm1, %v406_v19 }
 0x1b3   :  { %790 = vmatmul.msk.f32.gmra.mxu2 %vm456_vm1, %v1029_v60  ;;  %799 = vmatmul.msk.f32.gmra.mxu3 %vm456_vm1, %v1029_v60 }
 0x1bb   :  { %791 = vmatmul.msk.f32.gmra.mxu2 %vm456_vm1, %v408_v33  ;;  %800 = vmatmul.msk.f32.gmra.mxu3 %vm456_vm1, %v408_v33 }
 0x1c3   :  { %792 = vmatmul.msk.f32.gmra.mxu2 %vm456_vm1, %v409_v2  ;;  %801 = vmatmul.msk.f32.gmra.mxu3 %vm456_vm1, %v409_v2  ;;  %v419_v2 = vpop.permute.xlu2 %418 }
 0x1cb   :  { %793 = vmatmul.msk.f32.gmra.mxu2 %vm456_vm1, %v410_v35  ;;  %802 = vmatmul.msk.f32.gmra.mxu3 %vm456_vm1, %v410_v35 }
 0x20e   :  { %v1054_v36 = vpop.f32.mrf.mxu2  ;;  %v1056_v9 = vpop.f32.mrf.mxu3 }
 0x20f   :  { %v493_v29 = vadd.f32 %v1054_v36, %v414_v15  ;;  %v537_v30 = vadd.f32 %v1056_v9, %v414_v15 }
 0x211   :  { %v563_v35 = vmax.f32 %v493_v29, 0.0 }
 0x216   :  { %v495_v38 = vpop.f32.mrf.mxu2  ;;  %v539_v39 = vpop.f32.mrf.mxu3 }
 0x217   :  { %v496_v22 = vadd.f32 %v495_v38, %v419_v2  ;;  %v540_v23 = vadd.f32 %v539_v39, %v419_v2  ;;  %v564_v38 = vmax.f32 %v537_v30, 0.0 }
 0x219   :  { %v565_v34 = vmax.f32 %v496_v22, 0.0  ;;  %v566_v14 = vmax.f32 %v540_v23, 0.0 }
 0x21e   :  { %v498_v40 = vpop.f32.mrf.mxu2  ;;  %v542_v27 = vpop.f32.mrf.mxu3 }
 0x21f   :  { %v499_v10 = vadd.f32 %v498_v40, %v424_v51  ;;  %v543_v11 = vadd.f32 %v542_v27, %v424_v51  ;;  %v738_v51 = vlaneseq }
 0x221   :  { %v567_v33 = vmax.f32 %v499_v10, 0.0  ;;  %v568_v4 = vmax.f32 %v543_v11, 0.0  ;;  %vm1068_vm13 = vcmp.lt.s32.totalorder %v738_v51, 256 }
 0x226   :  { %v501_v41 = vpop.f32.mrf.mxu2  ;;  %v545_v28 = vpop.f32.mrf.mxu3 }
 0x227   :  { %v502_v3 = vadd.f32 %v501_v41, %v429_v50  ;;  %v546_v5 = vadd.f32 %v545_v28, %v429_v50 }
 0x229   :  { %v569_v25 = vmax.f32 %v502_v3, 0.0  ;;  %v570_v20 = vmax.f32 %v546_v5, 0.0 }
 0x22e   :  { %v504_v37 = vpop.f32.mrf.mxu2  ;;  %v548_v31 = vpop.f32.mrf.mxu3 }
 0x22f   :  { %v505_v61 = vadd.f32 %v504_v37, %v434_v47  ;;  %v549_v62 = vadd.f32 %v548_v31, %v434_v47 }
 0x231   :  { %v571_v52 = vmax.f32 %v505_v61, 0.0  ;;  %v572_v16 = vmax.f32 %v549_v62, 0.0 }
 0x236   :  { %v507_v18 = vpop.f32.mrf.mxu2  ;;  %v551_v44 = vpop.f32.mrf.mxu3 }
 0x237   :  { %v508_v57 = vadd.f32 %v507_v18, %v439_v21  ;;  %v552_v58 = vadd.f32 %v551_v44, %v439_v21 }
 0x239   :  { %v573_v6 = vmax.f32 %v508_v57, 0.0  ;;  %v574_v7 = vmax.f32 %v552_v58, 0.0 }
 0x23e   :  { %v510_v48 = vpop.f32.mrf.mxu2  ;;  %v554_v49 = vpop.f32.mrf.mxu3 }
 0x23f   :  { %v511_v42 = vadd.f32 %v510_v48, %v444_v45  ;;  %v555_v55 = vadd.f32 %v554_v49, %v444_v45 }
 0x241   :  { %v575_v63 = vmax.f32 %v511_v42, 0.0  ;;  %v576_v0 = vmax.f32 %v555_v55, 0.0 }
 0x246   :  { %v513_v53 = vpop.f32.mrf.mxu2  ;;  %v557_v54 = vpop.f32.mrf.mxu3 }
 0x247   :  { %v514_v43 = vadd.f32 %v513_v53, %v449_v32  ;;  %v558_v56 = vadd.f32 %v557_v54, %v449_v32 }
 0x249   :  { %v577_v59 = vmax.f32 %v514_v43, 0.0  ;;  %v578_v60 = vmax.f32 %v558_v56, 0.0 }
 0x24b   :  { %648 = vmatpush.msrb.mxu0 %v577_v59  ;;  %668 = vmatpush.msrb.mxu1 %v578_v60  ;;  %v626_v60 = vld.sshfl [vmem:[#allocation1] sm:$0xff pattern:$0x75316420] }
 0x24d   :  { %649 = vmatpush.msrb.mxu0 %v575_v63  ;;  %669 = vmatpush.msrb.mxu1 %v576_v0  ;;  %v627_v63 = vld.sshfl [vmem:[#allocation1 + $0x8] sm:$0xff pattern:$0x75316420] }
 0x24e   :  { %v516_v12 = vpop.f32.mrf.mxu2  ;;  %v560_v13 = vpop.f32.mrf.mxu3 }
 0x24f   :  { %v517_v17 = vadd.f32 %v516_v12, %v454_v8  ;;  %v561_v19 = vadd.f32 %v560_v13, %v454_v8  ;;  %650 = vmatpush.msrb.mxu0 %v573_v6  ;;  %670 = vmatpush.msrb.mxu1 %v574_v7  ;;  %v636_v7 = vpop.permute.xlu2 %635 }
 0x251   :  { %v803_v24 = vmul.f32 -1.442695, %v517_v17  ;;  %v804_v26 = vmul.f32 -1.442695, %v561_v19  ;;  %651 = vmatpush.msrb.mxu0 %v571_v52  ;;  %671 = vmatpush.msrb.mxu1 %v572_v16 }
 0x253   :  { %851 = vpow2.f32 %v803_v24  ;;  %652 = vmatpush.msrb.mxu0 %v569_v25  ;;  %672 = vmatpush.msrb.mxu1 %v570_v20 }
 0x254   :  { %853 = vpow2.f32 %v804_v26 }
 0x255   :  { %653 = vmatpush.msrb.mxu0 %v567_v33  ;;  %673 = vmatpush.msrb.mxu1 %v568_v4 }
 0x257   :  { %654 = vmatpush.msrb.mxu0 %v565_v34  ;;  %674 = vmatpush.msrb.mxu1 %v566_v14 }
 0x259   :  { %v852_v39 = vpop.eup %851  ;;  %655 = vmatpush.msrb.mxu0 %v563_v35  ;;  %675 = vmatpush.msrb.mxu1 %v564_v38 }
 0x25a   :  { %v854_v36 = vpop.eup %853  ;;  %v585_v40 = vadd.f32 1.0, %v852_v39  ;;  %805 = vmatmul.msk.f32.vlgmr.msrb.gmra.mxu0 %vm327_vm0, %v1058_v46  ;;  %806 = vmatmul.msk.f32.vlgmr.msrb.gmra.mxu1 %vm327_vm0, %v1058_v46 }
 0x25b   :  { %v586_v9 = vadd.f32 1.0, %v854_v36 }
 0x25c   :  { %855 = vrcp.f32 %v585_v40  ;;  %v598_v32 = vand.u32 2147483648, %v585_v40  ;;  %v596_v45 = vand.u32 2147483647, %v585_v40  ;;  %vm592_vm4 = vweird.f32 %v585_v40 }
 0x25d   :  { %857 = vrcp.f32 %v586_v9  ;;  %v613_v47 = vand.u32 2147483648, %v586_v9  ;;  %v611_v49 = vand.u32 2147483647, %v586_v9  ;;  %vm607_vm6 = vweird.f32 %v586_v9 }
 0x25e   :  { %v599_v46 = vor.u32 1.1754944e-38, %v598_v32  ;;  %vm597_vm7 = vcmp.eq.f32.partialorder %v596_v45, 8.507059e+37 }
 0x25f   :  { %v614_v53 = vor.u32 1.1754944e-38, %v613_v47  ;;  %vm612_vm9 = vcmp.eq.f32.partialorder %v611_v49, 8.507059e+37 }
 0x262   :  { %v856_v27 = vpop.eup %855 }
 0x263   :  { %v858_v41 = vpop.eup %857  ;;  %v588_v28 = vmul.f32 %v856_v27, %v585_v40  ;;  %vm593_vm2 = vweird.f32 %v856_v27 }
 0x264   :  { %v603_v37 = vmul.f32 %v858_v41, %v586_v9  ;;  %vm608_vm3 = vweird.f32 %v858_v41  ;;  %vm594_vm5 = vmor %vm592_vm4, %vm593_vm2 }
 0x265   :  { %v589_v31 = vsub.f32 1.0, %v588_v28  ;;  %vm609_vm8 = vmor %vm607_vm6, %vm608_vm3 }
 0x266   :  { %v604_v18 = vsub.f32 1.0, %v603_v37 }
 0x267   :  { %v590_v44 = vmul.f32 %v856_v27, %v589_v31 }
 0x268   :  { %v605_v48 = vmul.f32 %v858_v41, %v604_v18 }
 0x269   :  { %v591_v50 = vadd.f32 %v856_v27, %v590_v44 }
 0x26a   :  { %v606_v21 = vadd.f32 %v858_v41, %v605_v48 }
 0x26b   :  { %v595_v54 = vsel %vm594_vm5, %v856_v27, %v591_v50 }
 0x26c   :  { %v600_v42 = vsel %vm597_vm7, %v599_v46, %v595_v54  ;;  %v610_v55 = vsel %vm609_vm8, %v858_v41, %v606_v21 }
 0x26d   :  { %vm617_vm10 = vcmp.lt.f32.partialorder %v600_v42, 0.5  ;;  %v615_v43 = vsel %vm612_vm9, %v614_v53, %v610_v55 }
 0x26e   :  { %v619_v56 = vsel %vm617_vm10, 1, %v901_v1  ;;  %vm618_vm12 = vcmp.lt.f32.partialorder %v615_v43, 0.5  ;;  %v734_v57 = vrot.slane %v615_v43, 7 }
 0x26f   :  { %v621_v59 = vperm.slane %v619_v56, 0  ;;  %v620_v61 = vsel %vm618_vm12, 1, %v901_v1 }
 0x270   :  { %v622_v62 = vperm.slane %v620_v61, 0  ;;  %v736_v0 = vsel %vm735_vm11, %v600_v42, %v734_v57 }
 0x271   :  { %vm623_vm14 = vcmp.eq.s32.totalorder %v621_v59, 1  ;;  %742 = vst.msk [vmem:[%s1109_s2] ss:$8 sm:$0x3] %vm1068_vm13, %v736_v0 }
 0x272   :  { %v630_v2 = vsel %vm623_vm14, %v626_v60, 0.0  ;;  %vm624_vm15 = vcmp.eq.s32.totalorder %v622_v62, 1 }
 0x273   :  { %v746_v3 = vrot.slane %v630_v2, 7  ;;  %v1078_v5 = vsel %vm624_vm15, %v627_v63, 0.0 }
 0x274   :  { %v747_v6 = vrot.slane %v1078_v5, 7 }
 0x275   :  { %750 = vst [vmem:[%s1109_s2] sm:$0xe] %v746_v3 }
 0x276   :  { %751 = vst [vmem:[%s1109_s2 + $0x8] sm:$0xe] %v747_v6 }
 0x2d7   :  { %v657_v8 = vpop.f32.mrf.mxu0  ;;  %v677_v10 = vpop.f32.mrf.mxu1 }
 0x2d8   :  { %v658_v11 = vadd.f32 %v657_v8, %v636_v7  ;;  %v678_v12 = vadd.f32 %v677_v10, %v636_v7 }
 0x2da   :  { %v807_v13 = vmul.f32 -1.442695, %v658_v11  ;;  %v808_v15 = vmul.f32 -1.442695, %v678_v12 }
 0x2dc   :  { %859 = vpow2.f32 %v807_v13 }
 0x2dd   :  { %861 = vpow2.f32 %v808_v15 }
 0x2e2   :  { %v860_v52 = vpop.eup %859 }
 0x2e3   :  { %v862_v16 = vpop.eup %861  ;;  %v688_v17 = vadd.f32 1.0, %v860_v52 }
 0x2e4   :  { %v689_v19 = vadd.f32 1.0, %v862_v16 }
 0x2e5   :  { %863 = vrcp.f32 %v688_v17  ;;  %v701_v26 = vand.u32 2147483648, %v688_v17  ;;  %v699_v33 = vand.u32 2147483647, %v688_v17  ;;  %vm695_vm2 = vweird.f32 %v688_v17 }
 0x2e6   :  { %865 = vrcp.f32 %v689_v19  ;;  %v716_v4 = vand.u32 2147483648, %v689_v19  ;;  %v714_v14 = vand.u32 2147483647, %v689_v19  ;;  %vm710_vm4 = vweird.f32 %v689_v19 }
 0x2e7   :  { %v702_v38 = vor.u32 1.1754944e-38, %v701_v26  ;;  %vm700_vm5 = vcmp.eq.f32.partialorder %v699_v33, 8.507059e+37  ;;  %867 = vtanh.f32 %v658_v11 }
 0x2e8   :  { %v717_v40 = vor.u32 1.1754944e-38, %v716_v4  ;;  %vm715_vm7 = vcmp.eq.f32.partialorder %v714_v14, 8.507059e+37  ;;  %869 = vtanh.f32 %v678_v12 }
 0x2eb   :  { %v864_v22 = vpop.eup %863 }
 0x2ec   :  { %v866_v23 = vpop.eup %865  ;;  %v691_v25 = vmul.f32 %v864_v22, %v688_v17  ;;  %vm696_vm0 = vweird.f32 %v864_v22 }
 0x2ed   :  { %v706_v20 = vmul.f32 %v866_v23, %v689_v19  ;;  %vm711_vm1 = vweird.f32 %v866_v23  ;;  %vm697_vm3 = vmor %vm695_vm2, %vm696_vm0  ;;  %v868_v18 = vpop.eup %867 }
 0x2ee   :  { %v692_v24 = vsub.f32 1.0, %v691_v25  ;;  %vm712_vm6 = vmor %vm710_vm4, %vm711_vm1  ;;  %v870_v49 = vpop.eup %869 }
 0x2ef   :  { %v707_v29 = vsub.f32 1.0, %v706_v20 }
 0x2f0   :  { %v693_v30 = vmul.f32 %v864_v22, %v692_v24 }
 0x2f1   :  { %v708_v34 = vmul.f32 %v866_v23, %v707_v29 }
 0x2f2   :  { %v694_v35 = vadd.f32 %v864_v22, %v693_v30 }
 0x2f3   :  { %v709_v39 = vadd.f32 %v866_v23, %v708_v34 }
 0x2f4   :  { %v698_v36 = vsel %vm697_vm3, %v864_v22, %v694_v35 }
 0x2f5   :  { %v703_v9 = vsel %vm700_vm5, %v702_v38, %v698_v36  ;;  %v713_v27 = vsel %vm712_vm6, %v866_v23, %v709_v39 }
 0x2f6   :  { %vm720_vm8 = vcmp.ge.f32.partialorder %v703_v9, 0.5  ;;  %754 = vst [vmem:[#allocation1] sm:$0xff] %v703_v9  ;;  %v718_v41 = vsel %vm715_vm7, %v717_v40, %v713_v27 }
 0x2f7   :  { %v722_v28 = vsel %vm720_vm8, 1, %v901_v1  ;;  %vm721_vm9 = vcmp.ge.f32.partialorder %v718_v41, 0.5  ;;  %755 = vst [vmem:[#allocation1 + $0x9] sm:$0xff] %v718_v41 }
 0x2f8   :  { %v724_v37 = vperm.slane %v722_v28, 3  ;;  %v723_v31 = vsel %vm721_vm9, 1, %v901_v1 }
 0x2f9   :  { %v725_v32 = vperm.slane %v723_v31, 3 }
 0x2fa   :  { %vm726_vm10 = vcmp.eq.s32.totalorder %v724_v37, 1 }
 0x2fb   :  { %v728_v44 = vsel %vm726_vm10, %v630_v2, 0.0  ;;  %vm727_vm11 = vcmp.eq.s32.totalorder %v725_v32, 1 }
 0x2fc   :  { %v730_v45 = vadd.f32 %v868_v18, %v728_v44  ;;  %v764_v47 = vrot.slane %v728_v44, 3  ;;  %v729_v48 = vsel %vm727_vm11, %v1078_v5, 0.0 }
 0x2fd   :  { %v765_v50 = vrot.slane %v729_v48, 3  ;;  %v731_v46 = vadd.f32 %v870_v49, %v729_v48 }
 0x2fe   :  { %768 = vst [vmem:[%s1109_s2] sm:$0xe0] %v764_v47  ;;  %v757_v21 = vld [vmem:[#allocation1 + $0x3] ss:$9 sm:$0xff] }
 0x2ff   :  { %770 = vst [vmem:[%s1109_s2 + $0x10] sm:$0x7] %v730_v45 }
 0x300   :  { %809 = vst.msk [vmem:[%s1109_s2 + $0x4] ss:$8 sm:$0x3] %vm1068_vm13, %v757_v21 }
 0x301   :  { %769 = vst [vmem:[%s1109_s2 + $0x8] sm:$0xe0] %v765_v50 }
 0x302   :  { %771 = vst [vmem:[%s1109_s2 + $0x18] sm:$0x7] %v731_v46 }
 0x303   :  { %776 = vsyncpa [#allocation3], 1 }

</bundles_post_ra>
